<compile_context>
chip_gen: v7x
topology: tpu7x:2x2x1
jax: 0.10.0
libtpu: 0.0.40
codegen_flags: <defaults>
</compile_context>

<pallas_src>
import functools

import jax
import jax.numpy as jnp
from jax import lax
from jax.experimental import pallas as pl
from jax.experimental.pallas import tpu as pltpu


def _glu_kernel_single_k(x_ref, w_ref, b_ref, o_ref, *, nonlin):
    """Fast path: full reduction in one step -> no accumulator RMW."""
    tn = o_ref.shape[1]
    w = w_ref[...]                                   # (2, tn, dim_in)
    w2 = w.reshape(2 * tn, w.shape[-1])              # layout-free merge (tn % 128 == 0)
    # torch layout => x @ W^T : single wide-N MXU matmul.
    f = lax.dot_general(
        x_ref[...], w2,
        dimension_numbers=(((1,), (1,)), ((), ())),
        preferred_element_type=jnp.float32)          # (tm, 2*tn) f32
    b = b_ref[...].astype(jnp.float32)               # (2, tn)
    a = f[:, :tn] + b[0:1, :]                        # value half
    g = f[:, tn:] + b[1:2, :]                        # gate half
    o_ref[...] = (a * nonlin(g)).astype(o_ref.dtype)


def _glu_kernel_k_tiled(x_ref, w_ref, b_ref, o_ref, acc_ref, *, nonlin, dim_in):
    """K-tiled path: f32 VMEM accumulator + optional K-tail masking."""
    k = pl.program_id(2)
    nk = pl.num_programs(2)
    tn = o_ref.shape[1]
    tk = x_ref.shape[1]

    @pl.when(k == 0)
    def _init():
        acc_ref[...] = jnp.zeros_like(acc_ref)

    x = x_ref[...]
    w2 = w_ref[...].reshape(2 * tn, tk)

    if dim_in % tk != 0:
        # Last K block runs past dim_in: zero the out-of-range columns of BOTH
        # operands so padding garbage (possibly NaN/Inf) can never reach the
        # reduction. Cheap VPU selects; all-true mask on non-last steps.
        rem = dim_in - k * tk
        col = lax.broadcasted_iota(jnp.int32, (1, tk), 1)
        valid = col < rem
        x = jnp.where(valid, x, jnp.zeros_like(x))
        w2 = jnp.where(valid, w2, jnp.zeros_like(w2))

    acc_ref[...] += lax.dot_general(
        x, w2,
        dimension_numbers=(((1,), (1,)), ((), ())),
        preferred_element_type=jnp.float32)

    @pl.when(k == nk - 1)
    def _finalize():
        f = acc_ref[...]                             # (tm, 2*tn) f32
        b = b_ref[...].astype(jnp.float32)           # (2, tn)
        a = f[:, :tn] + b[0:1, :]
        g = f[:, tn:] + b[1:2, :]
        o_ref[...] = (a * nonlin(g)).astype(o_ref.dtype)


def glu_pallas(x, weight, bias, dim_out, nonlin=jax.nn.sigmoid,
               tile_m=512, tile_n=256, tile_k=2048):
    """GLU forward.

    x:      (..., dim_in)             feature axis last (torch.nn.Linear layout)
    weight: (2*dim_out, dim_in)       torch.nn.Linear weight layout
    bias:   (2*dim_out,) or None
    """
    *lead, dim_in = x.shape
    M = 1
    for d in lead:
        M *= d
    x2 = x.reshape(M, dim_in)

    # Free reshape (no HBM relayout): rows [:dim_out] = value half, [dim_out:] = gate.
    w3 = weight.reshape(2, dim_out, dim_in)
    b2 = (jnp.zeros((2, dim_out), dtype=x.dtype) if bias is None
          else bias.reshape(2, dim_out))

    def _round_up(a, b):
        return -(-a // b) * b

    itemsize = jnp.dtype(x.dtype).itemsize
    sublane = max(8, 32 // itemsize)          # 8 for f32, 16 for bf16

    assert tile_n % 128 == 0, "tile_n must be a multiple of 128"
    assert tile_m % sublane == 0, "tile_m must be a multiple of the sublane tile"

    # ---- VMEM budget (generation-aware; v7x has only 64 MiB per TC) ---------
    try:
        cap = getattr(pltpu.get_tpu_info(), "vmem_capacity_bytes", None) or (64 << 20)
    except Exception:  # pragma: no cover - conservative fallback
        cap = 64 << 20
    vmem_limit = min(int(cap * 0.8), 100 << 20)
    budget = int(vmem_limit * 0.9)

    # ---- tile selection ------------------------------------------------------
    tm = min(tile_m, _round_up(M, sublane))                 # don't create M-tiles that don't exist
    tn = min(tile_n, _round_up(dim_out, 128))               # lane-aligned, masked-writeback tail
    tk = dim_in if dim_in <= tile_k else (tile_k // 128) * 128

    def _fits(tm_, tn_, tk_):
        nk_ = pl.cdiv(dim_in, tk_)
        acc = tm_ * 2 * tn_ * 4 if nk_ > 1 else 0
        ws = (2 * (tm_ * tk_ + 2 * tn_ * tk_ + 2 * tn_) * itemsize   # double-buffered inputs
              + 2 * tm_ * tn_ * itemsize                              # double-buffered output
              + acc)
        return ws <= budget

    while not _fits(tm, tn, tk):
        if tk > 512 and dim_in > 512:
            tk = max(128, ((tk // 2) // 128) * 128)          # K-tail masking handles remainders
        elif tm > sublane:
            tm = max(sublane, tm // 2)
        elif tn > 128:
            tn = max(128, _round_up(tn // 2, 128))
        else:
            break  # tiles are already minimal; let the compiler cope

    # v7x has 2 TensorCores: make sure some "parallel" axis has >= 2 blocks when
    # shapes allow, otherwise one core idles on small (decode-like) shapes.
    if pl.cdiv(M, tm) == 1 and pl.cdiv(dim_out, tn) == 1:
        if dim_out > 128:
            tn = _round_up(pl.cdiv(dim_out, 2), 128)
        elif M > sublane:
            tm = _round_up(pl.cdiv(M, 2), sublane)

    gm = pl.cdiv(M, tm)
    gn = pl.cdiv(dim_out, tn)
    nk = pl.cdiv(dim_in, tk)

    params = pltpu.CompilerParams(
        dimension_semantics=(("parallel", "parallel", "arbitrary") if nk > 1
                             else ("parallel", "parallel")),
        vmem_limit_bytes=vmem_limit,
    )

    if nk == 1:
        # Fast path: no accumulator scratch, no zero-init, no += RMW.
        out = pl.pallas_call(
            functools.partial(_glu_kernel_single_k, nonlin=nonlin),
            out_shape=jax.ShapeDtypeStruct((M, dim_out), x.dtype),
            grid_spec=pltpu.PrefetchScalarGridSpec(
                num_scalar_prefetch=0,
                grid=(gm, gn),
                in_specs=[
                    pl.BlockSpec((tm, dim_in), lambda i, j: (i, 0)),        # x tile
                    pl.BlockSpec((2, tn, dim_in), lambda i, j: (0, j, 0)),  # W (value+gate)
                    pl.BlockSpec((2, tn), lambda i, j: (0, j)),             # bias (value+gate)
                ],
                out_specs=pl.BlockSpec((tm, tn), lambda i, j: (i, j)),
            ),
            compiler_params=params,
        )(x2, w3, b2)
    else:
        out = pl.pallas_call(
            functools.partial(_glu_kernel_k_tiled, nonlin=nonlin, dim_in=dim_in),
            out_shape=jax.ShapeDtypeStruct((M, dim_out), x.dtype),
            grid_spec=pltpu.PrefetchScalarGridSpec(
                num_scalar_prefetch=0,
                grid=(gm, gn, nk),
                in_specs=[
                    pl.BlockSpec((tm, tk), lambda i, j, k: (i, k)),         # x tile
                    pl.BlockSpec((2, tn, tk), lambda i, j, k: (0, j, k)),   # W (value+gate)
                    pl.BlockSpec((2, tn), lambda i, j, k: (0, j)),          # bias (value+gate)
                ],
                out_specs=pl.BlockSpec((tm, tn), lambda i, j, k: (i, j)),
                scratch_shapes=[pltpu.VMEM((tm, 2 * tn), jnp.float32)],
            ),
            compiler_params=params,
        )(x2, w3, b2)

    return out.reshape(*lead, dim_out)


if __name__ == "__main__":
    # Small shapes: batch=2, seq=8, dim_in=32, dim_out=32
    batch, seq, dim_in, dim_out = 2, 8, 32, 32
    key = jax.random.PRNGKey(0)
    kx, kw, kb = jax.random.split(key, 3)

    x = jax.random.normal(kx, (batch, seq, dim_in), dtype=jnp.float32)
    # Deterministic Linear params (torch layout: (2*dim_out, dim_in)).
    weight = jax.random.normal(kw, (2 * dim_out, dim_in), dtype=jnp.float32) * 0.1
    bias = jax.random.normal(kb, (2 * dim_out,), dtype=jnp.float32) * 0.1

    nonlin = jax.nn.sigmoid  # concrete choice for the nn.Module's `nonlin` arg

    out = glu_pallas(x, weight, bias, dim_out, nonlin=nonlin)
    out = jax.block_until_ready(out)

    # Pure-JAX reference check.
    feats = x @ weight.T + bias
    ref = feats[..., :dim_out] * nonlin(feats[..., dim_out:])
    assert out.shape == (batch, seq, dim_out)
    assert jnp.allclose(out, ref, atol=1e-5, rtol=1e-5), "mismatch vs reference"

    print("KERNEL_OK")
</pallas_src>

<mosaic_0001>
module attributes {stable_mosaic.version = 11 : i64} {
  func.func @_glu_kernel_single_k(%arg0: i32, %arg1: i32, %arg2: memref<8x32xf32, #tpu.memory_space<vmem>>, %arg3: memref<2x128x32xf32, #tpu.memory_space<vmem>>, %arg4: memref<2x128xf32, #tpu.memory_space<vmem>>, %arg5: memref<8x128xf32, #tpu.memory_space<vmem>>) attributes {dimension_semantics = [#tpu.dimension_semantics<parallel>, #tpu.dimension_semantics<parallel>], iteration_bounds = array<i64: 2, 1>, scalar_prefetch = 0 : i64, scratch_operands = 0 : i64, tpu.core_type = #tpu.core_type<tc>, window_params = [{transform_indices = @transform_0, window_bounds = array<i64: 8, 32>}, {transform_indices = @transform_1, window_bounds = array<i64: 2, 128, 32>}, {transform_indices = @transform_2, window_bounds = array<i64: 2, 128>}, {transform_indices = @transform_3, window_bounds = array<i64: 8, 128>}]} {
    %c0 = arith.constant 0 : index
    %c0_0 = arith.constant 0 : index
    %c0_1 = arith.constant 0 : index
    %0 = vector.load %arg3[%c0, %c0_0, %c0_1] : memref<2x128x32xf32, #tpu.memory_space<vmem>>, vector<2x128x32xf32>
    %1 = vector.shape_cast %0 : vector<2x128x32xf32> to vector<256x32xf32>
    %c0_2 = arith.constant 0 : index
    %c0_3 = arith.constant 0 : index
    %2 = vector.load %arg2[%c0_2, %c0_3] : memref<8x32xf32, #tpu.memory_space<vmem>>, vector<8x32xf32>
    %cst = arith.constant dense<0.000000e+00> : vector<8x256xf32>
    %3 = tpu.matmul %2, %1, %cst {dimension_numbers = #tpu.dot_dimension_numbers<[1], [1], [0], [0], [0, 0, 1, 0], [], []>} : vector<8x32xf32>, vector<256x32xf32>, vector<8x256xf32> -> vector<8x256xf32>
    %c0_4 = arith.constant 0 : index
    %c0_5 = arith.constant 0 : index
    %4 = vector.load %arg4[%c0_4, %c0_5] : memref<2x128xf32, #tpu.memory_space<vmem>>, vector<2x128xf32>
    %5 = vector.extract_strided_slice %3 {offsets = [0, 0], sizes = [8, 128], strides = [1, 1]} : vector<8x256xf32> to vector<8x128xf32>
    %6 = vector.extract_strided_slice %4 {offsets = [0, 0], sizes = [1, 128], strides = [1, 1]} : vector<2x128xf32> to vector<1x128xf32>
    %7 = vector.broadcast %6 : vector<1x128xf32> to vector<8x128xf32>
    %8 = arith.addf %5, %7 : vector<8x128xf32>
    %9 = vector.extract_strided_slice %3 {offsets = [0, 128], sizes = [8, 128], strides = [1, 1]} : vector<8x256xf32> to vector<8x128xf32>
    %10 = vector.extract_strided_slice %4 {offsets = [1, 0], sizes = [1, 128], strides = [1, 1]} : vector<2x128xf32> to vector<1x128xf32>
    %11 = vector.broadcast %10 : vector<1x128xf32> to vector<8x128xf32>
    %12 = arith.addf %9, %11 : vector<8x128xf32>
    %13 = arith.negf %12 : vector<8x128xf32>
    %14 = math.exp %13 : vector<8x128xf32>
    %cst_6 = arith.constant 1.000000e+00 : f32
    %15 = vector.broadcast %cst_6 : f32 to vector<8x128xf32>
    %16 = arith.addf %15, %14 : vector<8x128xf32>
    %17 = arith.divf %15, %16 : vector<8x128xf32>
    %18 = arith.mulf %8, %17 : vector<8x128xf32>
    %c0_7 = arith.constant 0 : index
    %c0_8 = arith.constant 0 : index
    %19 = vector.load %arg5[%c0_7, %c0_8] : memref<8x128xf32, #tpu.memory_space<vmem>>, vector<8x128xf32>
    tpu.vector_store %arg5[%c0_7, %c0_8], %18 {strides = array<i32>} : memref<8x128xf32, #tpu.memory_space<vmem>>, vector<8x128xf32>,
    return
  }
  func.func @transform_0(%arg0: i32, %arg1: i32) -> (i32, i32) {
    %c0_i32 = arith.constant 0 : i32
    %c0_i32_0 = arith.constant 0 : i32
    return %arg0, %c0_i32 : i32, i32
  }
  func.func @transform_1(%arg0: i32, %arg1: i32) -> (i32, i32, i32) {
    %c0_i32 = arith.constant 0 : i32
    %c0_i32_0 = arith.constant 0 : i32
    %c0_i32_1 = arith.constant 0 : i32
    return %c0_i32, %arg1, %c0_i32_0 : i32, i32, i32
  }
  func.func @transform_2(%arg0: i32, %arg1: i32) -> (i32, i32) {
    %c0_i32 = arith.constant 0 : i32
    %c0_i32_0 = arith.constant 0 : i32
    return %c0_i32, %arg1 : i32, i32
  }
  func.func @transform_3(%arg0: i32, %arg1: i32) -> (i32, i32) {
    %c0_i32 = arith.constant 0 : i32
    return %arg0, %arg1 : i32, i32
  }
}

</mosaic_0001>

<bundles_post_ra>
// kernel: tpu_custom_call.1
= control target key start
LH: loop header
LB: loop body
LE: loop exit
PB: predicated region body
PF: predicated region fallthrough
CT: control target
= control target key end

     0   :  { %8 = vsyncpa [#allocation3], 0  ;;  %s1213_s0 = inlined_call_operand.hbm [shape: f32[16,32], index: 0, kind: input, shape index: {}]   ;;  %s1214_s1 = inlined_call_operand.hbm [shape: f32[2,32,32], index: 1, kind: input, shape index: {}]   ;;  %s1215_s2 = inlined_call_operand.vmem [shape: f32[2,32], index: 2, kind: input, shape index: {}]   ;;  %s1216_s3 = inlined_call_operand.hbm [shape: f32[16,32], index: 3, kind: output, shape index: {}]  }
   0x1   :  { %10 = vsyncpa [#allocation3 + $0x1], 0 }
   0x2   :  { %11 = vsyncpa [#allocation6], 0 }
   0x3   :  { %12 = vsyncpa [#allocation4], 0 }
   0x4   :  { %14 = vsyncpa [#allocation4 + $0x1], 0  ;;  %s976_s12 = smov 0   ;;  %s978_s13 = smov 0  }
   0x5   :  { %s980_s14 = smov 0   ;;  %s982_s15 = smov 0  }
   0x6   :  { %s984_s16 = smov 0   ;;  %s986_s17 = smov 0  }
   0x7 LB: > { %s1007_s18 = sadd.s32 4294967295, %s944_s17   ;;  %s618_s19 = sadd.s32 4294967294, %s944_s17   ;;  %s944_s17 = sphi %s986_s17, %s20_s17   ;;  %s940_s16 = sphi %s984_s16, %s1241_s16   ;;  %s936_s15 = sphi %s982_s15, %s1240_s15   ;;  %s932_s14 = sphi %s980_s14, %s1239_s14   ;;  %s928_s13 = sphi %s978_s13, %s1238_s13   ;;  %s924_s12 = sphi %s976_s12, %s1237_s12  }
   0x8   : > { %s32_s20 = sadd.s32 1, %s940_s16  ;;  %s39_s21 = sadd.s32 1, %s932_s14 }
   0x9   : > { %p34_p0 = scmp.ge.s32.totalorder %s32_s20, 2  ;;  %p46_p1 = scmp.ne.s32.totalorder %s932_s14, %s928_s13 }
   0xa   : > { %p47_p2 = scmp.eq.s32.totalorder %s944_s17, 0  ;;  %p52_p3 = scmp.ne.s32.totalorder %s928_s13, %s924_s12 }
   0xb   : > { %s1243_s20 = smov (%p34_p0, %s32_s20), 0  ;;  %p1218_p5 = scmp.eq.s32.totalorder %s1007_s18, 0 }
   0xc   : > { %1221 = sst [smem:[#allocation13_spill]] %s1243_s20  ;;  %p1019_p4 = por %p47_p2, %p46_p1 }
   0xd   : > { %s36_s23 = ssub.s32 %s940_s16, %s1243_s20  ;;  %p130_p6 = scmp.eq.s32.totalorder %s1007_s18, 1 }
   0xe   : > { %p37_p7 = scmp.eq.s32.totalorder %s36_s23, 0  ;;  %p1029_p8 = por %p1218_p5, %p52_p3 }
   0xf   : > { %p1033_p9 = por %p130_p6, %p46_p1  ;;  %p136_p10 = scmp.eq.s32.totalorder %s618_s19, 1 }
  0x10   : > { %s1223_s24 = scalar_select %p1029_p8, 1, 0 }
  0x11   : > { %s1224_s25 = scalar_select %p1033_p9, 1, 0 }
  0x12   : > { %s1038_s26 = scalar_select %p37_p7, %s932_s14, %s39_s21  }
  0x13   : > { %p1040_p11 = por %p136_p10, %p52_p3  ;;  %p619_p12 = scmp.ge.s32.totalorder %s944_s17, 1 }
  0x14   : > { %p143_p13 = scmp.lt.s32.totalorder %s944_s17, 3 }
  0x15   : > { %s1225_s27 = scalar_select %p1040_p11, 1, 0 }
  0x16   : > { %p1046_p0 = pnand %p619_p12, %p143_p13 }
  0x17   : > { %p620_p1 = scmp.ne.s32.totalorder (!%p1046_p0), %s1007_s18, 0 }
  0x18   : > { %147 = sbr.rel (%p1046_p0) target bundleno = 48 (0x30), region = 12 }
  0x1f   : > { %151 = sbr.rel (%p620_p1) target bundleno = 48 (0x30), region = 16 }
  0x26   : > { %157 = vsyncadd [#allocation6], 3072  ;;  %s167_s29 = sld [smem:[#allocation0]]   ;;  %s946_s30 = smov [#allocation5]  }
  0x27   : > { %s175_s4 = sshll.u32 %s946_s30, 4  ;;  %s947_s5 = smov 512   ;;  %s176_s4 = int_to_ptr.vmem [resolvable:$true] %s175_s4 }
  0x28   : > { %182 = sst [smem:[#allocation9]] %s947_s5  ;;  %s948_s6 = smov 2048  }
  0x29   : > { %184 = sst [smem:[#allocation9 + $0x1]] %s948_s6  ;;  %s949_s7 = smov 4  }
  0x2a   : > { %186 = sst [smem:[#allocation9 + $0x2]] %s949_s7  ;;  %s950_s9 = smov 128  }
  0x2b   : > { %188 = sst [smem:[#allocation9 + $0x3]] %s950_s9  ;;  %s951_s11 = smov 8  }
  0x2c   : > { %s621_s8 = sshll.u32 %s167_s29, 26  ;;  %190 = sst [smem:[#allocation9 + $0x4]] %s950_s9 }
  0x2d   : > { %s622_s10 = sadd.s32 134217728, %s621_s8  ;;  %192 = sst [smem:[#allocation9 + $0x5]] %s951_s11 }
  0x2e   : > { %s952_s19 = smov [#allocation6]   ;;  %s953_s21 = smov [#allocation8]  }
  0x2f   : > { %194 = dma.general %s1214_s1, 1024, %s176_s4, %s952_s19, %s953_s21, [#allocation9], %s622_s10, 0  }
  0x30 PF: > { %p765_p3 = scmp.lt.s32.totalorder %s944_s17, 2  ;;  %s209_s29 = sand.u32 1, %s932_s14  }
  0x31   : > { %s626_s30 = sshll.u32 %s940_s16, 7  ;;  %s625_s5 = sshll.u32 %s209_s29, 3 }
  0x32   : > { %s1063_s8 = scalar_lea.hbm %s1213_s0, %s626_s30  ;;  %s213_s20 = scalar_lea.vmem [#allocation2], %s625_s5 }
  0x33   : > { %s220_s4 = sshll.u32 %s213_s20, 4  ;;  %p1067_p6 = pnand %p765_p3, %p1019_p4  ;;  %s1071_s4 = int_to_ptr.vmem [resolvable:$true] %s220_s4 }
  0x34   : > { %s210_s10 = scalar_lea.sflag [#allocation3], %s209_s29  ;;  %s828_s11 = scalar_lea.hbm %s1063_s8, 128 }
  0x35   : > { %p829_p7 = scmp.ne.s32.totalorder %s1063_s8, %s828_s11  ;;  %p830_p10 = pneg %p1067_p6 }
  0x36   : > { %s833_s22 = scalar_lea.hbm %s1213_s0, 256  ;;  %p834_p4 = scmp.lt.u32.totalorder %s1063_s8, %s1213_s0 }
  0x37   : > { %p831_p12 = pnand %p830_p10, %p829_p7  ;;  %p835_p1 = scmp.lt.u32.totalorder %s833_s22, %s828_s11 }
  0x38   : > { %p837_p2 = scmp.lt.u32.totalorder %s828_s11, %s1063_s8 }
  0x39   : > { %p832_p13 = pneg %p831_p12  ;;  %p836_p3 = por %p835_p1, %p834_p4 }
  0x3b   : > { %p838_p5 = por %p837_p2, %p836_p3 }
  0x3d   : > { %p839_p11 = pnand %p838_p5, %p832_p13 }
  0x3f   : > { %842 = shalt.err (!%p839_p11)
}
  0x40   : > { %s843_s29 = scalar_lea.vmem %s1071_s4, 128  ;;  %s954_s5 = smov [#allocation2]  }
  0x41   : > { %p844_p7 = scmp.ne.s32.totalorder %s1071_s4, %s843_s29  ;;  %s848_s6 = sshll.u32 %s954_s5, 4  ;;  %s849_s6 = int_to_ptr.vmem [resolvable:$false] %s848_s6 }
  0x42   : > { %s850_s7 = scalar_lea.vmem %s849_s6, 256  ;;  %p851_p8 = scmp.lt.s32.totalorder %s1071_s4, %s849_s6 }
  0x43   : > { %p846_p12 = pnand %p844_p7, %p830_p10  ;;  %p852_p4 = scmp.lt.s32.totalorder %s850_s7, %s843_s29 }
  0x45   : > { %p847_p9 = pneg %p846_p12  ;;  %p853_p1 = por %p852_p4, %p851_p8 }
  0x47   : > { %p854_p2 = pnand %p853_p1, %p847_p9 }
  0x49   : > { %857 = shalt.err (!%p854_p2)
}
  0x4a   : > { %760 = dma.hbm_to_vmem [thread:$0]  (!%p1067_p6), %s1063_s8, 128, %s1071_s4, %s210_s10  }
  0x4b   : > { %229 = sbr.rel (%p1046_p0) target bundleno = 410 (0x19a), region = 32  ;;  %s1101_s20 = sand.u32 (!%p1046_p0), 1, %s928_s13  }
  0x4c   : > { %s628_s11 = sshll.u32 (!%p1046_p0), %s1101_s20, 3  ;;  %s232_s19 = scalar_lea.sflag (!%p1046_p0), [#allocation3], %s1101_s20 }
  0x4d   : > { %s235_s21 = scalar_lea.vmem (!%p1046_p0), [#allocation2], %s628_s11  ;;  %p1228_p5 = scmp.ne.s32.totalorder (!%p1046_p0), %s1223_s24, 0 }
  0x52   : > { %911 = dma.done.wait (%p1228_p5), %s232_s19, 128  }
  0x53   : > { %913 = vsyncadd (%p1228_p5), %s232_s19, 4294967168  ;;  %p1229_p8 = scmp.eq.s32.totalorder %s1007_s18, 0 }
  0x55   : > { %915 = dma.done.wait (%p1229_p8), [#allocation6], 4096   ;;  %p1230_p9 = pmov %p1229_p8 }
  0x56   : > { %vm306_vm0 = vcmask 261120   ;;  %v289_v1 = vld [vmem:[#allocation5 + $0x80] sm:$0xff]  ;;  %v290_v2 = vld [vmem:[#allocation5 + $0x88] sm:$0xff]  ;;  %v291_v6 = vld [vmem:[#allocation5 + $0x90] sm:$0xff]  ;;  %v478_v50 = vlaneseq  ;;  %s666_s28 = sshll.u32 %s936_s15, 7  ;;  %s265_s8 = scalar_lea.vmem [#allocation7], %s628_s11 }
  0x57   : > { %917 = vsyncadd (%p1230_p9), [#allocation6], 4294963200  ;;  %v273_v3 = vld [vmem:[#allocation5] sm:$0xff]  ;;  %v703_v4 = vpack.c.bf16 %v290_v2, %v289_v1  ;;  %v274_v5 = vld [vmem:[#allocation5 + $0x8] sm:$0xff]  ;;  %s511_s4 = sshll.u32 %s265_s8, 4  ;;  %s1164_s22 = scalar_lea.hbm %s1216_s3, %s666_s28  ;;  %s1166_s4 = int_to_ptr.vmem [resolvable:$true] %s511_s4 }
  0x58   : > { %vm1117_vm1 = vmpackc.low %vm306_vm0, %vm306_vm0  ;;  %v292_v7 = vld [vmem:[#allocation5 + $0x98] sm:$0xff]  ;;  %v706_v8 = vpack.c.bf16 %v274_v5, %v273_v3  ;;  %v275_v10 = vld [vmem:[#allocation5 + $0x10] sm:$0xff]  ;;  %v479_v51 = vshrl.u32 %v478_v50, 7  ;;  %s497_s23 = scalar_lea.sflag [#allocation4], %s1101_s20  ;;  %s858_s30 = scalar_lea.vmem %s1166_s4, 128 }
  0x59   : > { %v709_v9 = vpack.c.bf16 %v292_v7, %v291_v6  ;;  %705 = vmatprep.subr.msk.bf16.mxu0 %vm1117_vm1, %v703_v4  ;;  %v276_v11 = vld [vmem:[#allocation5 + $0x18] sm:$0xff]  ;;  %v293_v12 = vld [vmem:[#allocation5 + $0xa0] sm:$0xff]  ;;  %v294_v13 = vld [vmem:[#allocation5 + $0xa8] sm:$0xff]  ;;  %p859_p11 = scmp.ne.s32.totalorder %s1166_s4, %s858_s30  ;;  %p1233_p0 = scmp.ne.s32.totalorder %s1224_s25, 0 }
  0x5a   : > { %708 = vmatpush3.bf16.xpose.msk.msra.mxu0 %vm1117_vm1, %v706_v8  ;;  %v712_v14 = vpack.c.bf16 %v276_v11, %v275_v10  ;;  %v715_v15 = vpack.c.bf16 %v294_v13, %v293_v12  ;;  %v305_v16 = vld [vmem:[%s235_s21] sm:$0xff]  ;;  %v277_v17 = vld [vmem:[#allocation5 + $0x20] sm:$0xff]  ;;  %v278_v18 = vld [vmem:[#allocation5 + $0x28] sm:$0xff]  ;;  %v485_v52 = vsub.s32 1, %v479_v51  ;;  %v480_v61 = vsub.s32 0, %v479_v51  ;;  %s955_s15 = smov [#allocation7]  }
  0x5b   : > { %711 = vmatprep.subr.msk.bf16.mxu0 %vm1117_vm1, %v709_v9  ;;  %701 = vmatprep.mubr.msk.f32.mxu0 %vm306_vm0, %v305_v16  ;;  %v295_v19 = vld [vmem:[#allocation5 + $0xb0] sm:$0xff]  ;;  %v296_v20 = vld [vmem:[#allocation5 + $0xb8] sm:$0xff]  ;;  %v718_v21 = vpack.c.bf16 %v278_v18, %v277_v17  ;;  %v297_v25 = vld [vmem:[#allocation5 + $0xc0] sm:$0xff]  ;;  %p860_p6 = pnand %p859_p11, %p1233_p0  ;;  %s862_s29 = sshll.u32 %s955_s15, 4  ;;  %s863_s29 = int_to_ptr.vmem [resolvable:$false] %s862_s29 }
  0x5c   : > { %v721_v22 = vpack.c.bf16 %v296_v20, %v295_v19  ;;  %v279_v23 = vld [vmem:[#allocation5 + $0x30] sm:$0xff]  ;;  %v280_v24 = vld [vmem:[#allocation5 + $0x38] sm:$0xff]  ;;  %v298_v26 = vld [vmem:[#allocation5 + $0xc8] sm:$0xff]  ;;  %s864_s5 = scalar_lea.vmem %s863_s29, 256  ;;  %p865_p13 = scmp.lt.s32.totalorder %s1166_s4, %s863_s29 }
  0x5d   : > { %v724_v27 = vpack.c.bf16 %v280_v24, %v279_v23  ;;  %v727_v28 = vpack.c.bf16 %v298_v26, %v297_v25  ;;  %v281_v29 = vld [vmem:[#allocation5 + $0x40] sm:$0xff]  ;;  %v282_v30 = vld [vmem:[#allocation5 + $0x48] sm:$0xff]  ;;  %v299_v31 = vld [vmem:[#allocation5 + $0xd0] sm:$0xff]  ;;  %p861_p10 = pneg %p860_p6  ;;  %p866_p3 = scmp.lt.s32.totalorder %s864_s5, %s858_s30 }
  0x5e   : > { %v300_v32 = vld [vmem:[#allocation5 + $0xd8] sm:$0xff]  ;;  %v730_v33 = vpack.c.bf16 %v282_v30, %v281_v29  ;;  %v283_v35 = vld [vmem:[#allocation5 + $0x50] sm:$0xff]  ;;  %v301_v37 = vld [vmem:[#allocation5 + $0xe0] sm:$0xff] }
  0x5f   : > { %v733_v34 = vpack.c.bf16 %v300_v32, %v299_v31  ;;  %v284_v36 = vld [vmem:[#allocation5 + $0x58] sm:$0xff]  ;;  %v302_v38 = vld [vmem:[#allocation5 + $0xe8] sm:$0xff]  ;;  %v285_v41 = vld [vmem:[#allocation5 + $0x60] sm:$0xff]  ;;  %p867_p7 = por %p866_p3, %p865_p13 }
  0x60   : > { %v736_v39 = vpack.c.bf16 %v284_v36, %v283_v35  ;;  %v739_v40 = vpack.c.bf16 %v302_v38, %v301_v37  ;;  %v286_v42 = vld [vmem:[#allocation5 + $0x68] sm:$0xff]  ;;  %v303_v43 = vld [vmem:[#allocation5 + $0xf0] sm:$0xff]  ;;  %v304_v44 = vld [vmem:[#allocation5 + $0xf8] sm:$0xff] }
  0x61   : > { %v742_v45 = vpack.c.bf16 %v286_v42, %v285_v41  ;;  %v745_v46 = vpack.c.bf16 %v304_v44, %v303_v43  ;;  %v287_v47 = vld [vmem:[#allocation5 + $0x70] sm:$0xff]  ;;  %v288_v48 = vld [vmem:[#allocation5 + $0x78] sm:$0xff]  ;;  %p868_p12 = pnand %p867_p7, %p861_p10 }
  0x62   : > { %714 = vmatpush3.bf16.xpose.msk.msra.mxu0 %vm1117_vm1, %v712_v14  ;;  %v748_v49 = vpack.c.bf16 %v288_v48, %v287_v47  ;;  %v477_v53 = vld [vmem:[%s1215_s2] sm:$0x3] }
  0x63   : > { %717 = vmatprep.subr.msk.bf16.mxu0 %vm1117_vm1, %v715_v15  ;;  %v486_v54 = vrot.slane %v477_v53, %v485_v52  ;;  %v481_v62 = vrot.slane %v477_v53, %v480_v61 }
  0x6a   : > { %720 = vmatpush3.bf16.xpose.msk.msra.mxu0 %vm1117_vm1, %v718_v21 }
  0x6b   : > { %723 = vmatprep.subr.msk.bf16.mxu0 %vm1117_vm1, %v721_v22 }
  0x72   : > { %726 = vmatpush3.bf16.xpose.msk.msra.mxu0 %vm1117_vm1, %v724_v27 }
  0x73   : > { %729 = vmatprep.subr.msk.bf16.mxu0 %vm1117_vm1, %v727_v28 }
  0x7a   : > { %732 = vmatpush3.bf16.xpose.msk.msra.mxu0 %vm1117_vm1, %v730_v33 }
  0x7b   : > { %735 = vmatprep.subr.msk.bf16.mxu0 %vm1117_vm1, %v733_v34 }
  0x82   : > { %738 = vmatpush3.bf16.xpose.msk.msra.mxu0 %vm1117_vm1, %v736_v39 }
  0x83   : > { %741 = vmatprep.subr.msk.bf16.mxu0 %vm1117_vm1, %v739_v40 }
  0x8a   : > { %744 = vmatpush3.bf16.xpose.msk.msra.mxu0 %vm1117_vm1, %v742_v45 }
  0x8b   : > { %747 = vmatprep.subr.msk.bf16.mxu0 %vm1117_vm1, %v745_v46 }
  0x92   : > { %750 = vmatpush3.bf16.xpose.msk.msra.mxu0 %vm1117_vm1, %v748_v49 }
  0x99   : > { %702 = vmatmul.mubr.msk.f32.vlgmr.msra.gmra.mrb[0].mxu0 %vm306_vm0, %v305_v16 }
 0x16c   : > { %v472_v55 = vpop.f32.mrb[0].mxu0 }
 0x16d   : > { %v474_v56 = vpop.f32.mrb[1].mxu0  ;;  %v482_v63 = vadd.f32 %v481_v62, %v472_v55 }
 0x16e   : > { %v487_v57 = vadd.f32 %v486_v54, %v474_v56 }
 0x170   : > { %v664_v58 = vmul.f32 -1.442695, %v487_v57 }
 0x172   : > { %824 = vpow2.f32 %v664_v58 }
 0x17c   : > { %v825_v59 = vpop.eup %824 }
 0x17d   : > { %v491_v60 = vadd.f32 1.0, %v825_v59 }
 0x17f   : > { %826 = vrcp.f32 %v491_v60 }
 0x189   : > { %v827_v0 = vpop.eup %826 }
 0x18a   : > { %v494_v1 = vmul.f32 %v827_v0, %v482_v63 }
 0x18c   : > { %495 = vst [vmem:[%s265_s8] sm:$0xff] %v494_v1 }
 0x18d   : > { %871 = shalt.err (!%p868_p12)
}
 0x18e   : > { %s872_s6 = scalar_lea.hbm %s1164_s22, 128  ;;  %s876_s11 = scalar_lea.hbm %s1216_s3, 256 }
 0x18f   : > { %p873_p4 = scmp.ne.s32.totalorder %s1164_s22, %s872_s6  ;;  %p877_p5 = scmp.lt.u32.totalorder %s1164_s22, %s1216_s3 }
 0x190   : > { %p878_p8 = scmp.lt.u32.totalorder %s876_s11, %s872_s6  ;;  %p880_p11 = scmp.lt.u32.totalorder %s872_s6, %s1164_s22 }
 0x191   : > { %p874_p1 = pnand %p873_p4, %p1233_p0 }
 0x192   : > { %p879_p9 = por %p878_p8, %p877_p5 }
 0x193   : > { %p875_p2 = pneg %p874_p1 }
 0x194   : > { %p881_p6 = por %p880_p11, %p879_p9 }
 0x196   : > { %p882_p10 = pnand %p881_p6, %p875_p2 }
 0x198   : > { %885 = shalt.err (!%p882_p10)
}
 0x199   : > { %755 = dma.vmem_to_hbm [thread:$0]  (%p1233_p0), %s1166_s4, 128, %s1164_s22, %s497_s23  }
 0x19a PF: > { %s523_s18 = sand.u32 1, %s924_s12   ;;  %p1234_p13 = scmp.ne.s32.totalorder %s1225_s27, 0 }
 0x19b   : > { %p1235_p3 = scmp.ge.s32.totalorder %s944_s17, 2  ;;  %s524_s24 = scalar_lea.sflag [#allocation4], %s523_s18 }
 0x19d   : > { %p762_p7 = pnand %p1235_p3, %p1234_p13 }
 0x19f   : > { %919 = dma.done.wait (!%p762_p7), %s524_s24, 128  }
 0x1a0   : > { %921 = vsyncadd (!%p762_p7), %s524_s24, 4294967168  ;;  %s20_s17 = sadd.s32 1, %s944_s17   ;;  %s1236_s25 = sld [smem:[#allocation13_spill]] }
 0x1a1   : > { %p17_p12 = scmp.ge.s32.totalorder %s20_s17, 4   ;;  %s1237_s12 = smov %s928_s13 }
 0x1a2   : > { %s1238_s13 = smov %s932_s14  ;;  %s1239_s14 = smov %s1038_s26 }
 0x1a3   : > { %s1240_s15 = smov %s940_s16  ;;  %19 = sbr.rel (!%p17_p12) target bundleno = 7 (0x7), region = 90 }
 0x1a6   : > { %s1241_s16 = smov %s1236_s25 }
 0x1aa   :  { %529 = vsyncpa [#allocation3], 1 }
 0x1ab   :  { %531 = vsyncpa [#allocation3 + $0x1], 1 }
 0x1ac   :  { %532 = vsyncpa [#allocation6], 1 }
 0x1ad   :  { %533 = vsyncpa [#allocation4], 1 }
 0x1ae   :  { %535 = vsyncpa [#allocation4 + $0x1], 1 }

</bundles_post_ra>
